<compile_context>
chip_gen: v5e
topology: v5e:2x2
jax: 0.10.0
libtpu: 0.0.40
codegen_flags: <defaults>
</compile_context>

<pallas_src>
import jax
import jax.numpy as jnp
from jax.experimental import pallas as pl
from jax.experimental.pallas import tpu as pltpu

TAU = 0.01
INV_TAU = 1.0 / TAU  # fold the divide into a multiply


def _selection_kernel(wT_ref, x_ref, b_ref, gT_ref, o_ref):
    # wT_ref: (E, t_dim) resident    x_ref: (tb, t_dim) natural-layout batch tile
    # b_ref:  (E, 1)     resident    gT_ref: (E, tb)    gumbel noise tile
    # o_ref:  (tb, E)
    # Contract on t_dim: (E, t_dim) . (tb, t_dim)^T -> (E, tb); batch on lanes,
    # experts on sublanes.
    logits = jax.lax.dot_general(
        wT_ref[...], x_ref[...],
        dimension_numbers=(((1,), (1,)), ((), ())),
        preferred_element_type=jnp.float32,
        precision=jax.lax.Precision.HIGHEST,
    ) + b_ref[...]                                     # bias broadcasts over lanes

    y = (logits + gT_ref[...]) * INV_TAU
    # numerically stable softmax over the expert (sublane) axis
    y = y - jnp.max(y, axis=0, keepdims=True)
    e = jnp.exp(y)
    inv_denom = pl.reciprocal(jnp.sum(e, axis=0, keepdims=True), approx=False)
    probs = e * inv_denom                              # (E, tb)
    # single in-kernel transpose (XLU) -> no separate output-transpose HBM pass
    o_ref[...] = probs.T.astype(o_ref.dtype)


def selection_forward(x, w, b, gumbel_t, *, tile_b=2048):
    """x: [B, t_dim] f32, w: [t_dim, E] f32, b: [E] f32,
    gumbel_t: [E, B] f32 (Gumbel(0,1) noise, kernel-native expert-major layout).

    Returns softmax((x @ w + b + gumbel_t.T) / tau, axis=1)  with shape [B, E].
    """
    B, t_dim = x.shape
    E = w.shape[1]

    # --- batch tile selection -------------------------------------------------
    # Lane-dense tiles (multiples of 128), as large as useful.
    tb = min(int(tile_b), pl.cdiv(B, 128) * 128)
    if B > 128:
        # keep >= 2 grid steps so v7x's two TensorCores both get work
        tb = min(tb, pl.cdiv(pl.cdiv(B, 2), 128) * 128)
    # VMEM budget: double-buffered x + gumbel + out tiles per batch column.
    # ~12 MiB keeps us inside v5e's 16 MiB default scoped VMEM (v6e/v7x have more).
    per_col_bytes = 4 * 2 * (t_dim + 2 * E)
    vmem_cap = max(128, ((12 * 1024 * 1024) // per_col_bytes) // 128 * 128)
    tb = max(128, min(tb, vmem_cap))
    Bp = pl.cdiv(B, tb) * tb

    # --- pad only when needed (single jnp.pad, no zeros+scatter copies) -------
    if Bp != B:
        x = jnp.pad(x, ((0, Bp - B), (0, 0)))
        gumbel_t = jnp.pad(gumbel_t, ((0, 0), (0, Bp - B)))

    wT = w.T                                   # (E, t_dim), stays resident in VMEM
    b2d = b.reshape(E, 1)                      # (E, 1),      stays resident in VMEM

    grid = (Bp // tb,)
    out = pl.pallas_call(
        _selection_kernel,
        out_shape=jax.ShapeDtypeStruct((Bp, E), jnp.float32),
        grid_spec=pltpu.PrefetchScalarGridSpec(
            num_scalar_prefetch=0,
            grid=grid,
            in_specs=[
                pl.BlockSpec((E, t_dim), lambda i: (0, 0)),   # W^T, resident
                pl.BlockSpec((tb, t_dim), lambda i: (i, 0)),  # x, natural layout
                pl.BlockSpec((E, 1),      lambda i: (0, 0)),  # bias, resident
                pl.BlockSpec((E, tb),     lambda i: (0, i)),  # gumbel^T tile
            ],
            out_specs=pl.BlockSpec((tb, E), lambda i: (i, 0)),
        ),
        compiler_params=pltpu.CompilerParams(
            dimension_semantics=("parallel",)),
    )(wT, x, b2d, gumbel_t)

    return out[:B]                              # [B, E], no wrapper transpose


if __name__ == "__main__":
    key = jax.random.PRNGKey(0)
    k_x, k_w, k_b, k_g = jax.random.split(key, 4)

    B, t_dim, num_experts = 16, 32, 8

    # deterministic "nn.Linear"-style init: U(-1/sqrt(t_dim), 1/sqrt(t_dim))
    bound = 1.0 / jnp.sqrt(jnp.float32(t_dim))
    w = jax.random.uniform(k_w, (t_dim, num_experts), jnp.float32,
                           minval=-bound, maxval=bound)
    b = jax.random.uniform(k_b, (num_experts,), jnp.float32,
                           minval=-bound, maxval=bound)
    x = jax.random.normal(k_x, (B, t_dim), jnp.float32)

    # Gumbel(0,1) noise sampled in the kernel-native (experts, batch) layout.
    # TODO(synk): torch's internal RNG for gumbel_softmax has no Pallas
    # equivalent; the noise is provided explicitly via jax.random.gumbel.
    gumbel_t = jax.random.gumbel(k_g, (num_experts, B), jnp.float32)

    out = selection_forward(x, w, b, gumbel_t)
    out = jax.block_until_ready(out)

    # reference in plain JAX
    ref = jax.nn.softmax((x @ w + b + gumbel_t.T) / TAU, axis=1)
    assert out.shape == (B, num_experts)
    assert jnp.allclose(out, ref, atol=5e-3, rtol=0), float(jnp.max(jnp.abs(out - ref)))
    assert jnp.allclose(jnp.sum(out, axis=1), 1.0, atol=1e-3)

    print("KERNEL_OK")
</pallas_src>

<mosaic_0001>
module attributes {stable_mosaic.version = 11 : i64} {
  func.func @_selection_kernel(%arg0: i32, %arg1: memref<8x32xf32, #tpu.memory_space<vmem>>, %arg2: memref<128x32xf32, #tpu.memory_space<vmem>>, %arg3: memref<8x1xf32, #tpu.memory_space<vmem>>, %arg4: memref<8x128xf32, #tpu.memory_space<vmem>>, %arg5: memref<128x8xf32, #tpu.memory_space<vmem>>) attributes {dimension_semantics = [#tpu.dimension_semantics<parallel>], iteration_bounds = array<i64: 1>, scalar_prefetch = 0 : i64, scratch_operands = 0 : i64, tpu.core_type = #tpu.core_type<tc>, window_params = [{pipeline_mode = #tpu.pipeline_mode<synchronous>, transform_indices = @transform_0, window_bounds = array<i64: 8, 32>}, {transform_indices = @transform_1, window_bounds = array<i64: 128, 32>}, {pipeline_mode = #tpu.pipeline_mode<synchronous>, transform_indices = @transform_2, window_bounds = array<i64: 8, 1>}, {transform_indices = @transform_3, window_bounds = array<i64: 8, 128>}, {transform_indices = @transform_4, window_bounds = array<i64: 128, 8>}]} {
    %c0 = arith.constant 0 : index
    %c0_0 = arith.constant 0 : index
    %0 = vector.load %arg1[%c0, %c0_0] : memref<8x32xf32, #tpu.memory_space<vmem>>, vector<8x32xf32>
    %c0_1 = arith.constant 0 : index
    %c0_2 = arith.constant 0 : index
    %1 = vector.load %arg2[%c0_1, %c0_2] : memref<128x32xf32, #tpu.memory_space<vmem>>, vector<128x32xf32>
    %cst = arith.constant dense<0.000000e+00> : vector<8x128xf32>
    %2 = tpu.matmul %0, %1, %cst {dimension_numbers = #tpu.dot_dimension_numbers<[1], [1], [0], [0], [0, 0, 1, 0], [], []>, precision = #tpu.contract_precision<fp32>} : vector<8x32xf32>, vector<128x32xf32>, vector<8x128xf32> -> vector<8x128xf32>
    %c0_3 = arith.constant 0 : index
    %c0_4 = arith.constant 0 : index
    %3 = vector.load %arg3[%c0_3, %c0_4] : memref<8x1xf32, #tpu.memory_space<vmem>>, vector<8x1xf32>
    %4 = vector.broadcast %3 : vector<8x1xf32> to vector<8x128xf32>
    %5 = arith.addf %2, %4 : vector<8x128xf32>
    %c0_5 = arith.constant 0 : index
    %c0_6 = arith.constant 0 : index
    %6 = vector.load %arg4[%c0_5, %c0_6] : memref<8x128xf32, #tpu.memory_space<vmem>>, vector<8x128xf32>
    %7 = arith.addf %5, %6 : vector<8x128xf32>
    %cst_7 = arith.constant 1.000000e+02 : f32
    %8 = vector.broadcast %cst_7 : f32 to vector<8x128xf32>
    %9 = arith.mulf %7, %8 : vector<8x128xf32>
    %cst_8 = arith.constant dense<0xFF800000> : vector<128xf32>
    %10 = vector.multi_reduction <maximumf>, %9, %cst_8 [0] : vector<8x128xf32> to vector<128xf32>
    %11 = vector.shape_cast %10 : vector<128xf32> to vector<1x128xf32>
    %12 = vector.broadcast %11 : vector<1x128xf32> to vector<8x128xf32>
    %13 = arith.subf %9, %12 : vector<8x128xf32>
    %14 = math.exp %13 : vector<8x128xf32>
    %cst_9 = arith.constant dense<0.000000e+00> : vector<128xf32>
    %15 = vector.multi_reduction <add>, %14, %cst_9 [0] : vector<8x128xf32> to vector<128xf32>
    %16 = vector.shape_cast %15 : vector<128xf32> to vector<1x128xf32>
    %17 = tpu.reciprocal %16 : vector<1x128xf32> -> vector<1x128xf32>
    %18 = vector.broadcast %17 : vector<1x128xf32> to vector<8x128xf32>
    %19 = arith.mulf %14, %18 : vector<8x128xf32>
    %20 = tpu.transpose %19, [1, 0] : vector<8x128xf32> -> vector<128x8xf32>
    %c0_10 = arith.constant 0 : index
    %c0_11 = arith.constant 0 : index
    %21 = vector.load %arg5[%c0_10, %c0_11] : memref<128x8xf32, #tpu.memory_space<vmem>>, vector<128x8xf32>
    tpu.vector_store %arg5[%c0_10, %c0_11], %20 {strides = array<i32>} : memref<128x8xf32, #tpu.memory_space<vmem>>, vector<128x8xf32>,
    return
  }
  func.func @transform_0(%arg0: i32) -> (i32, i32) {
    %c0_i32 = arith.constant 0 : i32
    %c0_i32_0 = arith.constant 0 : i32
    %c0_i32_1 = arith.constant 0 : i32
    return %c0_i32, %c0_i32_0 : i32, i32
  }
  func.func @transform_1(%arg0: i32) -> (i32, i32) {
    %c0_i32 = arith.constant 0 : i32
    %c0_i32_0 = arith.constant 0 : i32
    return %arg0, %c0_i32 : i32, i32
  }
  func.func @transform_2(%arg0: i32) -> (i32, i32) {
    %c0_i32 = arith.constant 0 : i32
    %c0_i32_0 = arith.constant 0 : i32
    %c0_i32_1 = arith.constant 0 : i32
    return %c0_i32, %c0_i32_0 : i32, i32
  }
  func.func @transform_3(%arg0: i32) -> (i32, i32) {
    %c0_i32 = arith.constant 0 : i32
    %c0_i32_0 = arith.constant 0 : i32
    return %c0_i32, %arg0 : i32, i32
  }
  func.func @transform_4(%arg0: i32) -> (i32, i32) {
    %c0_i32 = arith.constant 0 : i32
    %c0_i32_0 = arith.constant 0 : i32
    return %arg0, %c0_i32 : i32, i32
  }
}

</mosaic_0001>

<bundles_post_ra>
// kernel: tpu_custom_call.1
= control target key start
LH: loop header
LB: loop body
LE: loop exit
PB: predicated region body
PF: predicated region fallthrough
CT: control target
= control target key end

     0   :  { %vm40_vm0 = vcmask 261120   ;;  %vm498_vm5 = vcmask 64512   ;;  %s926_s1 = inlined_call_operand.vmem [shape: f32[128,32], index: 1, kind: input, shape index: {}]   ;;  %s927_s0 = inlined_call_operand.vmem [shape: f32[8,32], index: 0, kind: input, shape index: {}]   ;;  %s928_s2 = inlined_call_operand.vmem [shape: f32[8,1], index: 2, kind: input, shape index: {}]   ;;  %s929_s3 = inlined_call_operand.vmem [shape: f32[8,128], index: 3, kind: input, shape index: {}]   ;;  %s930_s4 = inlined_call_operand.vmem [shape: f32[128,8], index: 4, kind: output, shape index: {}]  }
   0x1   :  { %v33_v0 = vld [vmem:[%s926_s1 + $0x78] sm:$0xff]  ;;  %v32_v1 = vld [vmem:[%s926_s1 + $0x70] sm:$0xff]  ;;  %v31_v2 = vld [vmem:[%s926_s1 + $0x68] sm:$0xff] }
   0x2   :  { %v90_v3 = vsel %vm40_vm0, %v33_v0, 0  ;;  %v87_v4 = vsel %vm40_vm0, %v32_v1, 0  ;;  %v84_v5 = vsel %vm40_vm0, %v31_v2, 0  ;;  %v30_v6 = vld [vmem:[%s926_s1 + $0x60] sm:$0xff]  ;;  %v29_v7 = vld [vmem:[%s926_s1 + $0x58] sm:$0xff]  ;;  %v28_v17 = vld [vmem:[%s926_s1 + $0x50] sm:$0xff] }
   0x3   :  { %v570_v8 = vand.u32 4294901760, %v90_v3  ;;  %v572_v9 = vand.u32 4294901760, %v87_v4  ;;  %v574_v10 = vand.u32 4294901760, %v84_v5  ;;  %v81_v11 = vsel %vm40_vm0, %v30_v6, 0  ;;  %v27_v26 = vld [vmem:[%s926_s1 + $0x48] sm:$0xff]  ;;  %v26_v34 = vld [vmem:[%s926_s1 + $0x40] sm:$0xff] }
   0x4   :  { %v577_v12 = vand.u32 4294901760, %v81_v11  ;;  %v78_v16 = vsel %vm40_vm0, %v29_v7, 0  ;;  %v75_v21 = vsel %vm40_vm0, %v28_v17, 0  ;;  %v72_v29 = vsel %vm40_vm0, %v27_v26, 0  ;;  %v25_v41 = vld [vmem:[%s926_s1 + $0x38] sm:$0xff]  ;;  %v24_v48 = vld [vmem:[%s926_s1 + $0x30] sm:$0xff] }
   0x5   :  { %93 = vmatpush.xpose.msra.mxu0 %v570_v8  ;;  %v581_v13 = vsub.f32 %v90_v3, %v570_v8  ;;  %v584_v14 = vsub.f32 %v87_v4, %v572_v9  ;;  %v587_v15 = vsub.f32 %v84_v5, %v574_v10  ;;  %289 = vmatpush.xpose.msra.mxu3 %v570_v8  ;;  %v597_v20 = vand.u32 4294901760, %v78_v16  ;;  %v23_v55 = vld [vmem:[%s926_s1 + $0x28] sm:$0xff]  ;;  %v22_v62 = vld [vmem:[%s926_s1 + $0x20] sm:$0xff]  ;;  %v21_v5 = vld [vmem:[%s926_s1 + $0x18] sm:$0xff] }
   0x6   :  { %v609_v25 = vsub.f32 %v81_v11, %v577_v12  ;;  %v616_v28 = vand.u32 4294901760, %v75_v21  ;;  %v632_v35 = vand.u32 4294901760, %v72_v29  ;;  %v69_v36 = vsel %vm40_vm0, %v26_v34, 0  ;;  %v19_v34 = vld [vmem:[%s926_s1 + $0x8] sm:$0xff] }
   0x7   :  { %v135_v18 = vand.u32 4294901760, %v581_v13  ;;  %v141_v19 = vand.u32 4294901760, %v584_v14  ;;  %236 = vmatpush.xpose.msra.mxu2 %v581_v13  ;;  %v147_v24 = vand.u32 4294901760, %v587_v15  ;;  %v625_v33 = vsub.f32 %v78_v16, %v597_v20 }
   0x8   :  { %v153_v32 = vand.u32 4294901760, %v609_v25  ;;  %v641_v40 = vsub.f32 %v75_v21, %v616_v28  ;;  %v649_v42 = vsub.f32 %v72_v29, %v632_v35  ;;  %v651_v43 = vand.u32 4294901760, %v69_v36 }
   0x9   :  { %v136_v22 = vsub.f32 %v581_v13, %v135_v18  ;;  %95 = vmatpush.xpose.msra.mxu0 %v572_v9  ;;  %v142_v23 = vsub.f32 %v584_v14, %v141_v19  ;;  %291 = vmatpush.xpose.msra.mxu3 %v572_v9  ;;  %v148_v31 = vsub.f32 %v587_v15, %v147_v24  ;;  %v159_v39 = vand.u32 4294901760, %v625_v33  ;;  %v17_v13 = vld [vmem:[%s927_s0] sm:$0xff] }
   0xa   :  { %v154_v38 = vsub.f32 %v609_v25, %v153_v32  ;;  %v165_v46 = vand.u32 4294901760, %v641_v40  ;;  %v66_v47 = vsel %vm40_vm0, %v25_v41, 0  ;;  %v171_v49 = vand.u32 4294901760, %v649_v42 }
   0xb   :  { %v137_v27 = vand.u32 4294901760, %v136_v22  ;;  %239 = vmatpush.xpose.msra.mxu2 %v584_v14  ;;  %v143_v30 = vand.u32 4294901760, %v142_v23  ;;  %v149_v37 = vand.u32 4294901760, %v148_v31  ;;  %v160_v45 = vsub.f32 %v625_v33, %v159_v39  ;;  %v20_v22 = vld [vmem:[%s926_s1 + $0x10] sm:$0xff] }
   0xc   :  { %v155_v44 = vand.u32 4294901760, %v154_v38  ;;  %v666_v50 = vsub.f32 %v69_v36, %v651_v43  ;;  %v166_v52 = vsub.f32 %v641_v40, %v165_v46  ;;  %v672_v53 = vand.u32 4294901760, %v66_v47 }
   0xd   :  { %138 = vmatpush.xpose.msra.mxu1 %v137_v27  ;;  %97 = vmatpush.xpose.msra.mxu0 %v574_v10  ;;  %v161_v51 = vand.u32 4294901760, %v160_v45  ;;  %v63_v54 = vsel %vm40_vm0, %v24_v48, 0  ;;  %v172_v56 = vsub.f32 %v649_v42, %v171_v49  ;;  %v60_v61 = vsel %vm40_vm0, %v23_v55, 0 }
   0xe   :  { %293 = vmatpush.xpose.msra.mxu3 %v574_v10  ;;  %v177_v57 = vand.u32 4294901760, %v666_v50  ;;  %v167_v58 = vand.u32 4294901760, %v166_v52  ;;  %v686_v59 = vsub.f32 %v66_v47, %v672_v53  ;;  %v688_v60 = vand.u32 4294901760, %v63_v54  ;;  %v18_v47 = vld [vmem:[%s926_s1] sm:$0xff] }
   0xf   :  { %242 = vmatpush.xpose.msra.mxu2 %v587_v15  ;;  %v173_v63 = vand.u32 4294901760, %v172_v56  ;;  %v704_v3 = vand.u32 4294901760, %v60_v61  ;;  %v57_v4 = vsel %vm40_vm0, %v22_v62, 0  ;;  %v54_v21 = vsel %vm40_vm0, %v21_v5, 0 }
  0x10   :  { %v178_v0 = vsub.f32 %v666_v50, %v177_v57  ;;  %v183_v1 = vand.u32 4294901760, %v686_v59  ;;  %v702_v2 = vsub.f32 %v63_v54, %v688_v60  ;;  %v712_v6 = vand.u32 4294901760, %v57_v4 }
  0x11   :  { %144 = vmatpush.xpose.msra.mxu1 %v143_v30  ;;  %99 = vmatpush.xpose.msra.mxu0 %v577_v12  ;;  %v720_v17 = vsub.f32 %v60_v61, %v704_v3  ;;  %v736_v30 = vand.u32 4294901760, %v54_v21  ;;  %v51_v31 = vsel %vm40_vm0, %v20_v22, 0  ;;  %v48_v45 = vsel %vm40_vm0, %v19_v34, 0 }
  0x12   :  { %295 = vmatpush.xpose.msra.mxu3 %v577_v12  ;;  %v179_v7 = vand.u32 4294901760, %v178_v0  ;;  %v184_v11 = vsub.f32 %v686_v59, %v183_v1  ;;  %v189_v16 = vand.u32 4294901760, %v702_v2  ;;  %v729_v23 = vsub.f32 %v57_v4, %v712_v6 }
  0x13   :  { %245 = vmatpush.xpose.msra.mxu2 %v609_v25  ;;  %v195_v29 = vand.u32 4294901760, %v720_v17  ;;  %v750_v41 = vsub.f32 %v54_v21, %v736_v30  ;;  %v768_v55 = vand.u32 4294901760, %v48_v45  ;;  %v45_v56 = vsel %vm40_vm0, %v18_v47, 0 }
  0x14   :  { %v185_v26 = vand.u32 4294901760, %v184_v11  ;;  %v190_v27 = vsub.f32 %v702_v2, %v189_v16  ;;  %v201_v36 = vand.u32 4294901760, %v729_v23  ;;  %v781_v0 = vand.u32 4294901760, %v45_v56 }
  0x15   :  { %150 = vmatpush.xpose.msra.mxu1 %v149_v37  ;;  %101 = vmatpush.xpose.msra.mxu0 %v597_v20  ;;  %v196_v38 = vsub.f32 %v720_v17, %v195_v29  ;;  %v207_v52 = vand.u32 4294901760, %v750_v41  ;;  %v42_v14 = vsel %vm40_vm0, %v17_v13, 0 }
  0x16   :  { %297 = vmatpush.xpose.msra.mxu3 %v597_v20  ;;  %v191_v37 = vand.u32 4294901760, %v190_v27  ;;  %v202_v48 = vsub.f32 %v729_v23, %v201_v36  ;;  %v791_v11 = vsub.f32 %v45_v56, %v781_v0 }
  0x17   :  { %248 = vmatpush.xpose.msra.mxu2 %v625_v33  ;;  %v208_v61 = vsub.f32 %v750_v41, %v207_v52 }
  0x19   :  { %156 = vmatpush.xpose.msra.mxu1 %v155_v44  ;;  %103 = vmatpush.xpose.msra.mxu0 %v616_v28  ;;  %v752_v44 = vand.u32 4294901760, %v51_v31  ;;  %v209_v4 = vand.u32 4294901760, %v208_v61 }
  0x1a   :  { %299 = vmatpush.xpose.msra.mxu3 %v616_v28 }
  0x1b   :  { %251 = vmatpush.xpose.msra.mxu2 %v641_v40  ;;  %v766_v54 = vsub.f32 %v51_v31, %v752_v44 }
  0x1d   :  { %162 = vmatpush.xpose.msra.mxu1 %v161_v51  ;;  %105 = vmatpush.xpose.msra.mxu0 %v632_v35  ;;  %v197_v51 = vand.u32 4294901760, %v196_v38  ;;  %v213_v62 = vand.u32 4294901760, %v766_v54 }
  0x1e   :  { %301 = vmatpush.xpose.msra.mxu3 %v632_v35 }
  0x1f   :  { %254 = vmatpush.xpose.msra.mxu2 %v649_v42  ;;  %v214_v5 = vsub.f32 %v766_v54, %v213_v62 }
  0x21   :  { %168 = vmatpush.xpose.msra.mxu1 %v167_v58  ;;  %107 = vmatpush.xpose.msra.mxu0 %v651_v43  ;;  %v203_v58 = vand.u32 4294901760, %v202_v48  ;;  %v215_v21 = vand.u32 4294901760, %v214_v5 }
  0x22   :  { %303 = vmatpush.xpose.msra.mxu3 %v651_v43 }
  0x23   :  { %257 = vmatpush.xpose.msra.mxu2 %v666_v50 }
  0x25   :  { %174 = vmatpush.xpose.msra.mxu1 %v173_v63  ;;  %109 = vmatpush.xpose.msra.mxu0 %v672_v53  ;;  %v779_v63 = vsub.f32 %v48_v45, %v768_v55 }
  0x26   :  { %305 = vmatpush.xpose.msra.mxu3 %v672_v53 }
  0x27   :  { %260 = vmatpush.xpose.msra.mxu2 %v686_v59 }
  0x29   :  { %180 = vmatpush.xpose.msra.mxu1 %v179_v7  ;;  %111 = vmatpush.xpose.msra.mxu0 %v688_v60  ;;  %v219_v7 = vand.u32 4294901760, %v779_v63 }
  0x2a   :  { %307 = vmatpush.xpose.msra.mxu3 %v688_v60 }
  0x2b   :  { %263 = vmatpush.xpose.msra.mxu2 %v702_v2  ;;  %v220_v22 = vsub.f32 %v779_v63, %v219_v7 }
  0x2d   :  { %186 = vmatpush.xpose.msra.mxu1 %v185_v26  ;;  %113 = vmatpush.xpose.msra.mxu0 %v704_v3  ;;  %v225_v26 = vand.u32 4294901760, %v791_v11  ;;  %v221_v27 = vand.u32 4294901760, %v220_v22 }
  0x2e   :  { %309 = vmatpush.xpose.msra.mxu3 %v704_v3 }
  0x2f   :  { %266 = vmatpush.xpose.msra.mxu2 %v720_v17  ;;  %v226_v31 = vsub.f32 %v791_v11, %v225_v26 }
  0x31   :  { %192 = vmatpush.xpose.msra.mxu1 %v191_v37  ;;  %115 = vmatpush.xpose.msra.mxu0 %v712_v6  ;;  %v227_v34 = vand.u32 4294901760, %v226_v31 }
  0x32   :  { %311 = vmatpush.xpose.msra.mxu3 %v712_v6 }
  0x33   :  { %269 = vmatpush.xpose.msra.mxu2 %v729_v23 }
  0x35   :  { %198 = vmatpush.xpose.msra.mxu1 %v197_v51  ;;  %117 = vmatpush.xpose.msra.mxu0 %v736_v30 }
  0x36   :  { %313 = vmatpush.xpose.msra.mxu3 %v736_v30 }
  0x37   :  { %272 = vmatpush.xpose.msra.mxu2 %v750_v41 }
  0x39   :  { %204 = vmatpush.xpose.msra.mxu1 %v203_v58  ;;  %119 = vmatpush.xpose.msra.mxu0 %v752_v44 }
  0x3a   :  { %315 = vmatpush.xpose.msra.mxu3 %v752_v44 }
  0x3b   :  { %275 = vmatpush.xpose.msra.mxu2 %v766_v54 }
  0x3d   :  { %210 = vmatpush.xpose.msra.mxu1 %v209_v4  ;;  %121 = vmatpush.xpose.msra.mxu0 %v768_v55 }
  0x3e   :  { %317 = vmatpush.xpose.msra.mxu3 %v768_v55 }
  0x3f   :  { %278 = vmatpush.xpose.msra.mxu2 %v779_v63 }
  0x41   :  { %216 = vmatpush.xpose.msra.mxu1 %v215_v21  ;;  %123 = vmatpush.xpose.msra.mxu0 %v781_v0 }
  0x42   :  { %319 = vmatpush.xpose.msra.mxu3 %v781_v0 }
  0x43   :  { %281 = vmatpush.xpose.msra.mxu2 %v791_v11 }
  0x45   :  { %330 = vmatpush.xpose.msrb.mxu0 %v135_v18  ;;  %222 = vmatpush.xpose.msra.mxu1 %v221_v27 }
  0x49   :  { %334 = vmatpush.xpose.msrb.mxu0 %v141_v19  ;;  %228 = vmatpush.xpose.msra.mxu1 %v227_v34  ;;  %v34_v19 = vld [vmem:[%s928_s2] sm:$0xff] }
  0x4d   :  { %397 = vmatpush.xpose.msrb.mxu1 %v570_v8  ;;  %338 = vmatpush.xpose.msrb.mxu0 %v147_v24  ;;  %v124_v8 = vand.u32 4294901760, %v42_v14 }
  0x4f   :  { %230 = vmatmul.f32.vlgmr.msra.gmra.mxu1 %v124_v8 }
  0x51   :  { %399 = vmatpush.xpose.msrb.mxu1 %v572_v9  ;;  %342 = vmatpush.xpose.msrb.mxu0 %v153_v32  ;;  %v125_v9 = vsub.f32 %v42_v14, %v124_v8 }
  0x53   :  { %284 = vmatmul.f32.vlgmr.msra.gmra.mxu2 %v125_v9  ;;  %v126_v15 = vand.u32 4294901760, %v125_v9 }
  0x55   :  { %401 = vmatpush.xpose.msrb.mxu1 %v574_v10  ;;  %346 = vmatpush.xpose.msrb.mxu0 %v159_v39  ;;  %v127_v10 = vsub.f32 %v125_v9, %v126_v15 }
  0x56   :  { %323 = vmatmul.f32.vlgmr.msra.gmra.mxu3 %v126_v15 }
  0x57   :  { %v128_v18 = vand.u32 4294901760, %v127_v10 }
  0x59   :  { %403 = vmatpush.xpose.msrb.mxu1 %v577_v12  ;;  %350 = vmatpush.xpose.msrb.mxu0 %v165_v46  ;;  %v526_v12 = vmov 0  }
  0x5a   :  { %129 = vmatmul.f32.vlgmr.msra.gmra.mxu0 %v128_v18  ;;  %521 = vset.pattern.permute.xlu0 %v526_v12 }
  0x5b   :  { %37 = vperm.xlu0 %521, %v34_v19  }
  0x5d   :  { %405 = vmatpush.xpose.msrb.mxu1 %v597_v20  ;;  %354 = vmatpush.xpose.msrb.mxu0 %v171_v49  ;;  %v433_v49 = vld [vmem:[%s929_s3] sm:$0xff] }
  0x61   :  { %407 = vmatpush.xpose.msrb.mxu1 %v616_v28  ;;  %358 = vmatpush.xpose.msrb.mxu0 %v177_v57 }
  0x65   :  { %409 = vmatpush.xpose.msrb.mxu1 %v632_v35  ;;  %362 = vmatpush.xpose.msrb.mxu0 %v183_v1 }
  0x69   :  { %411 = vmatpush.xpose.msrb.mxu1 %v651_v43  ;;  %366 = vmatpush.xpose.msrb.mxu0 %v189_v16 }
  0x6d   :  { %413 = vmatpush.xpose.msrb.mxu1 %v672_v53  ;;  %370 = vmatpush.xpose.msrb.mxu0 %v195_v29 }
  0x71   :  { %415 = vmatpush.xpose.msrb.mxu1 %v688_v60  ;;  %374 = vmatpush.xpose.msrb.mxu0 %v201_v36 }
  0x75   :  { %417 = vmatpush.xpose.msrb.mxu1 %v704_v3  ;;  %378 = vmatpush.xpose.msrb.mxu0 %v207_v52 }
  0x79   :  { %419 = vmatpush.xpose.msrb.mxu1 %v712_v6  ;;  %382 = vmatpush.xpose.msrb.mxu0 %v213_v62 }
  0x7d   :  { %421 = vmatpush.xpose.msrb.mxu1 %v736_v30  ;;  %386 = vmatpush.xpose.msrb.mxu0 %v219_v7 }
  0x81   :  { %423 = vmatpush.xpose.msrb.mxu1 %v752_v44  ;;  %390 = vmatpush.xpose.msrb.mxu0 %v225_v26 }
  0x84   :  { %392 = vmatmul.f32.vlgmr.msrb.gmra.mxu0 %v124_v8 }
  0x85   :  { %425 = vmatpush.xpose.msrb.mxu1 %v768_v55 }
  0x89   :  { %427 = vmatpush.xpose.msrb.mxu1 %v781_v0 }
  0x8c   :  { %429 = vmatmul.f32.vlgmr.msrb.gmra.mxu1 %v124_v8 }
  0xcc   :  { %v231_v28 = vpop.f32.mrf.mxu1 }
  0xcd   :  { %v38_v20 = vpop.permute.xlu0 %37 }
  0xd6   :  { %v285_v33 = vpop.f32.mrf.mxu2 }
  0xd7   :  { %v130_v24 = vpop.f32.mrf.mxu0 }
  0xd8   :  { %v131_v25 = vadd.f32 %v130_v24, %v38_v20 }
  0xd9   :  { %v324_v39 = vpop.f32.mrf.mxu3 }
  0xda   :  { %v232_v32 = vadd.f32 %v231_v28, %v131_v25 }
  0xdc   :  { %v286_v35 = vadd.f32 %v285_v33, %v232_v32 }
  0xde   :  { %v325_v40 = vadd.f32 %v324_v39, %v286_v35 }
 0x101   :  { %v393_v42 = vpop.f32.mrf.mxu0 }
 0x102   :  { %v394_v43 = vadd.f32 %v393_v42, %v325_v40 }
 0x109   :  { %v430_v46 = vpop.f32.mrf.mxu1 }
 0x10a   :  { %v431_v50 = vadd.f32 %v430_v46, %v394_v43 }
 0x10c   :  { %v434_v53 = vadd.f32 %v433_v49, %v431_v50 }
 0x10e   :  { %v435_v57 = vmul.f32 100.0, %v434_v53 }
 0x110   :  { %v436_v59 = vrot.slane %v435_v57, 4 }
 0x112   :  { %v437_v60 = vmax.f32 %v435_v57, %v436_v59 }
 0x114   :  { %v438_v1 = vrot.slane %v437_v60, 2 }
 0x116   :  { %v439_v2 = vmax.f32 %v437_v60, %v438_v1 }
 0x118   :  { %v440_v3 = vrot.slane %v439_v2, 1 }
 0x11a   :  { %v441_v6 = vmax.f32 %v439_v2, %v440_v3 }
 0x11c   :  { %v442_v16 = vsub.f32 %v435_v57, %v441_v6 }
 0x11e   :  { %v443_v17 = vmul.f32 1.442695, %v442_v16 }
 0x120   :  { %522 = vpow2.f32 %v443_v17 }
 0x126   :  { %v523_v23 = vpop.eup %522 }
 0x127   :  { %v445_v29 = vrot.slane %v523_v23, 4 }
 0x129   :  { %v446_v30 = vadd.f32 %v523_v23, %v445_v29 }
 0x12b   :  { %v447_v36 = vrot.slane %v446_v30, 2 }
 0x12d   :  { %v448_v37 = vadd.f32 %v447_v36, %v446_v30 }
 0x12f   :  { %v449_v38 = vrot.slane %v448_v37, 1 }
 0x131   :  { %v450_v41 = vadd.f32 %v449_v38, %v448_v37 }
 0x133   :  { %524 = vrcp.f32 %v450_v41  ;;  %v462_v48 = vand.u32 2147483648, %v450_v41  ;;  %v460_v52 = vand.u32 2147483647, %v450_v41  ;;  %vm456_vm2 = vweird.f32 %v450_v41 }
 0x135   :  { %v463_v55 = vor.u32 1.1754944e-38, %v462_v48  ;;  %vm461_vm4 = vcmp.eq.f32.partialorder %v460_v52, 8.507059e+37 }
 0x139   :  { %v525_v44 = vpop.eup %524 }
 0x13a   :  { %v452_v45 = vmul.f32 %v525_v44, %v450_v41  ;;  %vm457_vm1 = vweird.f32 %v525_v44 }
 0x13b   :  { %vm458_vm3 = vmor %vm456_vm2, %vm457_vm1 }
 0x13c   :  { %v453_v47 = vsub.f32 1.0, %v452_v45 }
 0x13e   :  { %v454_v51 = vmul.f32 %v525_v44, %v453_v47 }
 0x140   :  { %v455_v54 = vadd.f32 %v525_v44, %v454_v51 }
 0x142   :  { %v459_v56 = vsel %vm458_vm3, %v525_v44, %v455_v54 }
 0x143   :  { %v464_v58 = vsel %vm461_vm4, %v463_v55, %v459_v56 }
 0x144   :  { %v465_v61 = vmul.f32 %v523_v23, %v464_v58 }
 0x146   :  { %466 = vxpose.xlu0.b32.start.end [1/1] (short) %v465_v61, 128 }
 0x1ea   :  { %v482_v62 = vpop.trf.xlu0 }
 0x1eb   :  { %499 = vst.msk [vmem:[%s930_s4] sm:$0xff] %vm498_vm5, %v482_v62 }
 0x1f2   :  { %v483_v63 = vpop.trf.xlu0 }
 0x1f3   :  { %500 = vst.msk [vmem:[%s930_s4 + $0x8] sm:$0xff] %vm498_vm5, %v483_v63 }
 0x1fa   :  { %v484_v0 = vpop.trf.xlu0 }
 0x1fb   :  { %501 = vst.msk [vmem:[%s930_s4 + $0x10] sm:$0xff] %vm498_vm5, %v484_v0 }
 0x202   :  { %v485_v4 = vpop.trf.xlu0 }
 0x203   :  { %502 = vst.msk [vmem:[%s930_s4 + $0x18] sm:$0xff] %vm498_vm5, %v485_v4 }
 0x20a   :  { %v486_v5 = vpop.trf.xlu0 }
 0x20b   :  { %503 = vst.msk [vmem:[%s930_s4 + $0x20] sm:$0xff] %vm498_vm5, %v486_v5 }
 0x212   :  { %v487_v7 = vpop.trf.xlu0 }
 0x213   :  { %504 = vst.msk [vmem:[%s930_s4 + $0x28] sm:$0xff] %vm498_vm5, %v487_v7 }
 0x21a   :  { %v488_v11 = vpop.trf.xlu0 }
 0x21b   :  { %505 = vst.msk [vmem:[%s930_s4 + $0x30] sm:$0xff] %vm498_vm5, %v488_v11 }
 0x222   :  { %v489_v21 = vpop.trf.xlu0 }
 0x223   :  { %506 = vst.msk [vmem:[%s930_s4 + $0x38] sm:$0xff] %vm498_vm5, %v489_v21 }
 0x22a   :  { %v490_v22 = vpop.trf.xlu0 }
 0x22b   :  { %507 = vst.msk [vmem:[%s930_s4 + $0x40] sm:$0xff] %vm498_vm5, %v490_v22 }
 0x232   :  { %v491_v26 = vpop.trf.xlu0 }
 0x233   :  { %508 = vst.msk [vmem:[%s930_s4 + $0x48] sm:$0xff] %vm498_vm5, %v491_v26 }
 0x23a   :  { %v492_v27 = vpop.trf.xlu0 }
 0x23b   :  { %509 = vst.msk [vmem:[%s930_s4 + $0x50] sm:$0xff] %vm498_vm5, %v492_v27 }
 0x242   :  { %v493_v31 = vpop.trf.xlu0 }
 0x243   :  { %510 = vst.msk [vmem:[%s930_s4 + $0x58] sm:$0xff] %vm498_vm5, %v493_v31 }
 0x24a   :  { %v494_v34 = vpop.trf.xlu0 }
 0x24b   :  { %511 = vst.msk [vmem:[%s930_s4 + $0x60] sm:$0xff] %vm498_vm5, %v494_v34 }
 0x252   :  { %v495_v13 = vpop.trf.xlu0 }
 0x253   :  { %512 = vst.msk [vmem:[%s930_s4 + $0x68] sm:$0xff] %vm498_vm5, %v495_v13 }
 0x25a   :  { %v496_v14 = vpop.trf.xlu0 }
 0x25b   :  { %513 = vst.msk [vmem:[%s930_s4 + $0x70] sm:$0xff] %vm498_vm5, %v496_v14 }
 0x262   :  { %v497_v8 = vpop.trf.xlu0 }
 0x263   :  { %514 = vst.msk [vmem:[%s930_s4 + $0x78] sm:$0xff] %vm498_vm5, %v497_v8 }

</bundles_post_ra>
